<compile_context>
chip_gen: v6e
topology: v6e:2x2x1
jax: 0.10.0
libtpu: 0.0.40
codegen_flags: <defaults>
</compile_context>

<pallas_src>
import functools
import math

import jax
import jax.numpy as jnp
from jax import lax
from jax.experimental import pallas as pl
from jax.experimental.pallas import tpu as pltpu


# --------------------------------------------------------------------------- #
# Small helpers
# --------------------------------------------------------------------------- #
def _round_up(x, m):
    return ((x + m - 1) // m) * m


def _choose_tile(dim, target, align):
    """Pick a tile size (multiple of `align`) for `dim`, minimizing padding.

    If the aligned dim fits within the target, use the whole dim as one tile.
    Otherwise search tiles in [target/2, target] (multiples of `align`) and
    keep the one whose round_up(dim, tile) is smallest (ties -> larger tile).
    """
    dim_a = _round_up(max(dim, 1), align)
    target = max(align, (target // align) * align)
    if dim_a <= target:
        return dim_a
    lo = max(align, (target // 2 // align) * align)
    best_t, best_total = None, None
    t = target
    while t >= lo:
        total = _round_up(dim_a, t)
        if best_total is None or total < best_total:
            best_t, best_total = t, total
        t -= align
    return best_t


# Generation-tuned tile targets: chosen so tm*tn/(tm+tn) clears each
# generation's HBM ridge point, and so the double-buffered footprint fits the
# per-TC VMEM (v7x: only 64 MiB physical -> cap requests at 48 MiB).
_TARGETS = {
    "v5e":   dict(tm=512,  tn=512,  tk=1024, vmem_cap=100 << 20),
    "v6e":   dict(tm=1024, tn=2048, tk=1024, vmem_cap=100 << 20),
    "v7x":   dict(tm=1024, tn=1024, tk=1024, vmem_cap=48 << 20),
    "other": dict(tm=512,  tn=1024, tk=512,  vmem_cap=48 << 20),
}


def _detect_generation():
    try:
        kind = jax.devices()[0].device_kind.lower()
    except Exception:
        return "other"
    if "v5" in kind and ("lite" in kind or "5e" in kind):
        return "v5e"
    if "v6" in kind:
        return "v6e"
    if "7" in kind:
        return "v7x"
    return "other"


def _vmem_footprint(tm, tn, tk, in_item, out_item, use_scratch):
    fp = 2 * tm * tk * in_item          # x tile, double-buffered
    fp += 2 * tk * tn * in_item         # w tile, double-buffered
    fp += 2 * tm * tn * out_item        # output tile, double-buffered
    if use_scratch:
        fp += tm * tn * 4               # f32 accumulator scratch
    fp += 2 * 2 * tn * 4                # scale + bias (1, tn) f32
    return fp


# --------------------------------------------------------------------------- #
# Kernels
# --------------------------------------------------------------------------- #
def _gelu(y):
    # Exactly the PyTorch GeLU module's tanh approximation.
    return 0.5 * y * (1.0 + jnp.tanh(y * 0.7978845608 * (1.0 + 0.044715 * y * y)))


def _kernel_acc_in_out(x_ref, w_ref, s_ref, b_ref, o_ref, *, activations):
    """f32 output: the resident output block doubles as the accumulator."""
    k = pl.program_id(2)
    part = jnp.dot(x_ref[...], w_ref[...], preferred_element_type=jnp.float32)

    @pl.when(k == 0)
    def _():
        o_ref[...] = part

    @pl.when(k > 0)
    def _():
        o_ref[...] += part

    @pl.when(k == pl.num_programs(2) - 1)
    def _():
        y = o_ref[...] * s_ref[...] + b_ref[...]
        if activations:
            y = _gelu(y)
        o_ref[...] = y


def _kernel_acc_scratch(x_ref, w_ref, s_ref, b_ref, o_ref, acc_ref, *, activations):
    """Narrow (e.g. bf16) output: accumulate in an f32 VMEM scratch."""
    k = pl.program_id(2)
    part = jnp.dot(x_ref[...], w_ref[...], preferred_element_type=jnp.float32)

    @pl.when(k == 0)
    def _():
        acc_ref[...] = part

    @pl.when(k > 0)
    def _():
        acc_ref[...] += part

    @pl.when(k == pl.num_programs(2) - 1)
    def _():
        y = acc_ref[...] * s_ref[...] + b_ref[...]
        if activations:
            y = _gelu(y)
        o_ref[...] = y.astype(o_ref.dtype)


# --------------------------------------------------------------------------- #
# Layer wrapper (weight preprocessing hoisted out of the per-call path)
# --------------------------------------------------------------------------- #
class PallasLinear:
    """Weight-normalized linear layer (+ optional tanh-GeLU) on TPU.

    Construct once per parameter set: the weight-norm scale, the transposed /
    cast / padded weight and the padded bias are computed here and reused by
    every forward call. Use compute_dtype=jnp.float32 for PyTorch-exact math
    (default bf16 MXU inputs trade a little precision for speed; accumulation
    is always f32).
    """

    def __init__(self, v, g, b, activations=False, *,
                 compute_dtype=jnp.bfloat16, out_dtype=jnp.float32,
                 tm=None, tn=None, tk=None):
        v = jnp.asarray(v)
        g = jnp.asarray(g)
        b = jnp.asarray(b)
        self.out_features, self.in_features = v.shape
        self.activations = bool(activations)
        self.compute_dtype = jnp.dtype(compute_dtype)
        self.out_dtype = jnp.dtype(out_dtype)
        self._use_scratch = self.out_dtype != jnp.dtype(jnp.float32)

        gen = _detect_generation()
        tgt = _TARGETS[gen]
        self._vmem_cap = tgt["vmem_cap"]
        tm_t = tm if tm is not None else tgt["tm"]
        tn_t = tn if tn is not None else tgt["tn"]
        tk_t = tk if tk is not None else tgt["tk"]

        in_item = self.compute_dtype.itemsize
        out_item = self.out_dtype.itemsize
        headroom = 8 << 20

        # Shrink tile *targets* until the pipelined footprint fits under the cap.
        while (_vmem_footprint(tm_t, tn_t, tk_t, in_item, out_item,
                               self._use_scratch) + headroom > self._vmem_cap):
            if tk_t >= tn_t and tk_t >= tm_t and tk_t > 128:
                tk_t //= 2
            elif tn_t >= tm_t and tn_t > 128:
                tn_t //= 2
            elif tm_t > 64:
                tm_t //= 2
            else:
                break

        Np0 = _round_up(self.out_features, 128)
        # v7x has two TensorCores: ensure skinny-batch GEMMs still expose >= 2
        # blocks along the "parallel" N axis.
        if tn is None and gen == "v7x" and Np0 >= 256:
            tn_t = min(tn_t, max(128, Np0 // 2))

        self._tm_target = tm_t
        self.tk = _choose_tile(self.in_features, tk_t, 128)
        self.tn = _choose_tile(self.out_features, tn_t, 128)
        self.Kp = _round_up(self.in_features, self.tk)
        self.Np = _round_up(self.out_features, self.tn)

        # ---- hoisted preprocessing (runs once per layer) -------------------
        # weight_norm folded into a per-output-column scale:
        #   scale = g / ||v||_row ;  y = (x @ v.T) * scale + b
        scale = (g.reshape(self.out_features).astype(jnp.float32) *
                 lax.rsqrt(jnp.sum(v.astype(jnp.float32) ** 2, axis=1)))
        bias = b.reshape(self.out_features).astype(jnp.float32)
        w = v.T.astype(self.compute_dtype)                  # (in, out) — MXU-ready

        if (self.Kp, self.Np) == (self.in_features, self.out_features):
            self.wp = w
            self.sp = scale.reshape(1, self.out_features)
            self.bp = bias.reshape(1, self.out_features)
        else:
            # Padded K rows contribute 0 to the dot; padded N columns get
            # scale=0 / bias=0 (GeLU(0)=0) and are sliced off after the call.
            self.wp = (jnp.zeros((self.Kp, self.Np), self.compute_dtype)
                       .at[:self.in_features, :self.out_features].set(w))
            self.sp = (jnp.zeros((1, self.Np), jnp.float32)
                       .at[0, :self.out_features].set(scale))
            self.bp = (jnp.zeros((1, self.Np), jnp.float32)
                       .at[0, :self.out_features].set(bias))

        self._apply_cache = {}

    # ------------------------------------------------------------------ #
    def _build_apply(self, B):
        tm = _choose_tile(B, self._tm_target, 16)
        Mp = _round_up(B, tm)
        tn, tk, Kp, Np = self.tn, self.tk, self.Kp, self.Np
        grid = (Mp // tm, Np // tn, Kp // tk)

        in_item = self.compute_dtype.itemsize
        out_item = self.out_dtype.itemsize
        footprint = _vmem_footprint(tm, tn, tk, in_item, out_item,
                                    self._use_scratch)
        vmem_limit = int(min(self._vmem_cap,
                             max(32 << 20, footprint + (8 << 20))))

        if self._use_scratch:
            kernel = functools.partial(_kernel_acc_scratch,
                                       activations=self.activations)
            scratch = [pltpu.VMEM((tm, tn), jnp.float32)]
        else:
            kernel = functools.partial(_kernel_acc_in_out,
                                       activations=self.activations)
            scratch = []

        cost = pl.CostEstimate(
            flops=2 * Mp * Np * Kp,
            bytes_accessed=(Mp * Kp * in_item + Kp * Np * in_item
                            + Mp * Np * out_item + 2 * Np * 4),
            transcendentals=(Mp * Np if self.activations else 0),
        )

        call = pl.pallas_call(
            kernel,
            out_shape=jax.ShapeDtypeStruct((Mp, Np), self.out_dtype),
            grid_spec=pltpu.PrefetchScalarGridSpec(
                num_scalar_prefetch=0,
                grid=grid,
                in_specs=[
                    pl.BlockSpec((tm, tk), lambda i, j, k: (i, k)),   # x
                    pl.BlockSpec((tk, tn), lambda i, j, k: (k, j)),   # w (K, N)
                    pl.BlockSpec((1, tn), lambda i, j, k: (0, j)),    # scale
                    pl.BlockSpec((1, tn), lambda i, j, k: (0, j)),    # bias
                ],
                out_specs=pl.BlockSpec((tm, tn), lambda i, j, k: (i, j)),
                scratch_shapes=scratch,
            ),
            compiler_params=pltpu.CompilerParams(
                dimension_semantics=("parallel", "parallel", "arbitrary"),
                vmem_limit_bytes=vmem_limit,
            ),
            cost_estimate=cost,
        )

        in_f, out_f = self.in_features, self.out_features
        cdt = self.compute_dtype

        def apply(x2d, wp, sp, bp):
            if (Mp, Kp) == (B, in_f):
                xp = x2d.astype(cdt)                # no padding needed
            else:
                xp = (jnp.zeros((Mp, Kp), cdt)
                      .at[:B, :in_f].set(x2d.astype(cdt)))
            out = call(xp, wp, sp, bp)
            if (Mp, Np) != (B, out_f):
                out = out[:B, :out_f]
            return out

        return jax.jit(apply)

    # ------------------------------------------------------------------ #
    def __call__(self, x):
        x = jnp.asarray(x)
        lead = x.shape[:-1]
        x2d = x.reshape(-1, self.in_features)
        B = x2d.shape[0]
        fn = self._apply_cache.get(B)
        if fn is None:
            fn = self._build_apply(B)
            self._apply_cache[B] = fn
        out = fn(x2d, self.wp, self.sp, self.bp)
        return out.reshape(*lead, self.out_features)


def linear_forward(x, v, g, b, activations=False, *,
                   compute_dtype=jnp.bfloat16, out_dtype=jnp.float32,
                   tm=None, tn=None, tk=None):
    """One-shot convenience wrapper. For repeated forwards with the same
    parameters, construct a PallasLinear once (hoists the weight transpose,
    cast, pad and weight-norm scale out of the hot path)."""
    layer = PallasLinear(v, g, b, activations,
                         compute_dtype=compute_dtype, out_dtype=out_dtype,
                         tm=tm, tn=tn, tk=tk)
    return layer(x)


# --------------------------------------------------------------------------- #
# Parameter init + pure-JAX reference (mirrors the PyTorch module)
# --------------------------------------------------------------------------- #
def init_params(key, in_features, out_features, activations=False):
    std = math.sqrt((2.0 if activations else 1.0) / in_features)
    v = std * jax.random.normal(key, (out_features, in_features), jnp.float32)
    # weight_norm initializes g to the per-row norm, so the effective weight
    # at init equals v.
    g = jnp.sqrt(jnp.sum(v * v, axis=1, keepdims=True))  # (out, 1)
    b = jnp.zeros((out_features,), jnp.float32)
    return v, g, b


def _reference(x, v, g, b, activations=False):
    norm = jnp.sqrt(jnp.sum(v * v, axis=1, keepdims=True))
    w = v * (g / norm)
    y = x @ w.T + b
    if activations:
        y = 0.5 * y * (1.0 + jnp.tanh(y * 0.7978845608 * (1.0 + 0.044715 * y * y)))
    return y


if __name__ == "__main__":
    key = jax.random.PRNGKey(0)
    k_x, k_w1, k_w2 = jax.random.split(key, 3)

    batch, in_features, out_features = 8, 32, 16
    x = jax.random.normal(k_x, (batch, in_features), jnp.float32)

    v1, g1, b1 = init_params(k_w1, in_features, out_features, activations=False)
    v2, g2, b2 = init_params(k_w2, in_features, out_features, activations=True)

    r1 = _reference(x, v1, g1, b1, activations=False)
    r2 = _reference(x, v2, g2, b2, activations=True)

    # Exact f32 path (faithful to the PyTorch module semantics).
    y1 = linear_forward(x, v1, g1, b1, activations=False,
                        compute_dtype=jnp.float32)
    y2 = linear_forward(x, v2, g2, b2, activations=True,
                        compute_dtype=jnp.float32)
    jax.block_until_ready((y1, y2))
    assert jnp.allclose(y1, r1, atol=1e-5, rtol=1e-5)
    assert jnp.allclose(y2, r2, atol=1e-5, rtol=1e-5)

    # Default fast path: bf16 MXU inputs, f32 accumulation, f32 output;
    # layer object reused across calls (weight prep hoisted, apply jit-cached).
    layer = PallasLinear(v2, g2, b2, activations=True)
    y2b = layer(x)
    y2c = layer(x)           # reuses cached jitted apply + prepped weights
    jax.block_until_ready((y2b, y2c))
    assert jnp.allclose(y2b, r2, atol=5e-2, rtol=5e-2)
    assert jnp.allclose(y2c, r2, atol=5e-2, rtol=5e-2)

    # bf16-output path (scratch accumulator kernel, halved output writeback).
    y1b = linear_forward(x, v1, g1, b1, activations=False,
                         out_dtype=jnp.bfloat16)
    jax.block_until_ready(y1b)
    assert jnp.allclose(y1b.astype(jnp.float32), r1, atol=5e-2, rtol=5e-2)

    print("KERNEL_OK")
</pallas_src>

<mosaic_0001>
module attributes {stable_mosaic.version = 11 : i64} {
  func.func @_kernel_acc_in_out(%arg0: i32, %arg1: i32, %arg2: i32, %arg3: memref<16x128xf32, #tpu.memory_space<vmem>>, %arg4: memref<128x128xf32, #tpu.memory_space<vmem>>, %arg5: memref<1x128xf32, #tpu.memory_space<vmem>>, %arg6: memref<1x128xf32, #tpu.memory_space<vmem>>, %arg7: memref<16x128xf32, #tpu.memory_space<vmem>>) attributes {dimension_semantics = [#tpu.dimension_semantics<parallel>, #tpu.dimension_semantics<parallel>, #tpu.dimension_semantics<arbitrary>], iteration_bounds = array<i64: 1, 1, 1>, scalar_prefetch = 0 : i64, scratch_operands = 0 : i64, tpu.core_type = #tpu.core_type<tc>, window_params = [{transform_indices = @transform_0, window_bounds = array<i64: 16, 128>}, {transform_indices = @transform_1, window_bounds = array<i64: 128, 128>}, {transform_indices = @transform_2, window_bounds = array<i64: 1, 128>}, {transform_indices = @transform_3, window_bounds = array<i64: 1, 128>}, {transform_indices = @transform_4, window_bounds = array<i64: 16, 128>}]} {
    %c0 = arith.constant 0 : index
    %c0_0 = arith.constant 0 : index
    %0 = vector.load %arg3[%c0, %c0_0] : memref<16x128xf32, #tpu.memory_space<vmem>>, vector<16x128xf32>
    %c0_1 = arith.constant 0 : index
    %c0_2 = arith.constant 0 : index
    %1 = vector.load %arg4[%c0_1, %c0_2] : memref<128x128xf32, #tpu.memory_space<vmem>>, vector<128x128xf32>
    %cst = arith.constant dense<0.000000e+00> : vector<16x128xf32>
    %2 = tpu.matmul %0, %1, %cst {dimension_numbers = #tpu.dot_dimension_numbers<[1], [0], [0], [1], [0, 0, 1, 1], [], []>} : vector<16x128xf32>, vector<128x128xf32>, vector<16x128xf32> -> vector<16x128xf32>
    %c0_i32 = arith.constant 0 : i32
    %3 = arith.cmpi eq, %arg2, %c0_i32 : i32
    %4 = arith.extui %3 : i1 to i32
    %c0_i32_3 = arith.constant 0 : i32
    %5 = arith.cmpi ne, %4, %c0_i32_3 : i32
    scf.if %5 {
      %c0_8 = arith.constant 0 : index
      %c0_9 = arith.constant 0 : index
      %12 = vector.load %arg7[%c0_8, %c0_9] : memref<16x128xf32, #tpu.memory_space<vmem>>, vector<16x128xf32>
      tpu.vector_store %arg7[%c0_8, %c0_9], %2 {strides = array<i32>} : memref<16x128xf32, #tpu.memory_space<vmem>>, vector<16x128xf32>,
    } else {
    }
    %c0_i32_4 = arith.constant 0 : i32
    %6 = arith.cmpi sgt, %arg2, %c0_i32_4 : i32
    %7 = arith.extui %6 : i1 to i32
    %c0_i32_5 = arith.constant 0 : i32
    %8 = arith.cmpi ne, %7, %c0_i32_5 : i32
    scf.if %8 {
      %c0_8 = arith.constant 0 : index
      %c0_9 = arith.constant 0 : index
      %12 = vector.load %arg7[%c0_8, %c0_9] : memref<16x128xf32, #tpu.memory_space<vmem>>, vector<16x128xf32>
      %13 = arith.addf %12, %2 : vector<16x128xf32>
      %c0_10 = arith.constant 0 : index
      %c0_11 = arith.constant 0 : index
      %14 = vector.load %arg7[%c0_10, %c0_11] : memref<16x128xf32, #tpu.memory_space<vmem>>, vector<16x128xf32>
      tpu.vector_store %arg7[%c0_10, %c0_11], %13 {strides = array<i32>} : memref<16x128xf32, #tpu.memory_space<vmem>>, vector<16x128xf32>,
    } else {
    }
    %c0_i32_6 = arith.constant 0 : i32
    %9 = arith.cmpi eq, %arg2, %c0_i32_6 : i32
    %10 = arith.extui %9 : i1 to i32
    %c0_i32_7 = arith.constant 0 : i32
    %11 = arith.cmpi ne, %10, %c0_i32_7 : i32
    scf.if %11 {
      %c0_8 = arith.constant 0 : index
      %c0_9 = arith.constant 0 : index
      %12 = vector.load %arg7[%c0_8, %c0_9] : memref<16x128xf32, #tpu.memory_space<vmem>>, vector<16x128xf32>
      %c0_10 = arith.constant 0 : index
      %c0_11 = arith.constant 0 : index
      %13 = vector.load %arg5[%c0_10, %c0_11] : memref<1x128xf32, #tpu.memory_space<vmem>>, vector<1x128xf32>
      %14 = vector.broadcast %13 : vector<1x128xf32> to vector<16x128xf32>
      %15 = arith.mulf %12, %14 : vector<16x128xf32>
      %c0_12 = arith.constant 0 : index
      %c0_13 = arith.constant 0 : index
      %16 = vector.load %arg6[%c0_12, %c0_13] : memref<1x128xf32, #tpu.memory_space<vmem>>, vector<1x128xf32>
      %17 = vector.broadcast %16 : vector<1x128xf32> to vector<16x128xf32>
      %18 = arith.addf %15, %17 : vector<16x128xf32>
      %c0_14 = arith.constant 0 : index
      %c0_15 = arith.constant 0 : index
      %19 = vector.load %arg7[%c0_14, %c0_15] : memref<16x128xf32, #tpu.memory_space<vmem>>, vector<16x128xf32>
      tpu.vector_store %arg7[%c0_14, %c0_15], %18 {strides = array<i32>} : memref<16x128xf32, #tpu.memory_space<vmem>>, vector<16x128xf32>,
    } else {
    }
    return
  }
  func.func @transform_0(%arg0: i32, %arg1: i32, %arg2: i32) -> (i32, i32) {
    %c0_i32 = arith.constant 0 : i32
    return %arg0, %arg2 : i32, i32
  }
  func.func @transform_1(%arg0: i32, %arg1: i32, %arg2: i32) -> (i32, i32) {
    %c0_i32 = arith.constant 0 : i32
    return %arg2, %arg1 : i32, i32
  }
  func.func @transform_2(%arg0: i32, %arg1: i32, %arg2: i32) -> (i32, i32) {
    %c0_i32 = arith.constant 0 : i32
    %c0_i32_0 = arith.constant 0 : i32
    return %c0_i32, %arg1 : i32, i32
  }
  func.func @transform_3(%arg0: i32, %arg1: i32, %arg2: i32) -> (i32, i32) {
    %c0_i32 = arith.constant 0 : i32
    %c0_i32_0 = arith.constant 0 : i32
    return %c0_i32, %arg1 : i32, i32
  }
  func.func @transform_4(%arg0: i32, %arg1: i32, %arg2: i32) -> (i32, i32) {
    %c0_i32 = arith.constant 0 : i32
    return %arg0, %arg1 : i32, i32
  }
}

</mosaic_0001>

<bundles_post_ra>
// kernel: apply.1
= control target key start
LH: loop header
LB: loop body
LE: loop exit
PB: predicated region body
PF: predicated region fallthrough
CT: control target
= control target key end

     0   :  { %9 = vsyncpa [#allocation3], 0  ;;  %s250_s15 = smov [#allocation2]   ;;  %s299_s0 = inlined_call_operand.vmem [shape: f32[16,128], index: 0, kind: input, shape index: {}]   ;;  %s300_s1 = inlined_call_operand.hbm [shape: f32[128,128], index: 1, kind: input, shape index: {}]   ;;  %s301_s2 = inlined_call_operand.vmem [shape: f32[1,128], index: 2, kind: input, shape index: {}]   ;;  %s302_s3 = inlined_call_operand.vmem [shape: f32[1,128], index: 3, kind: input, shape index: {}]   ;;  %s303_s4 = inlined_call_operand.vmem [shape: f32[16,128], index: 4, kind: output, shape index: {}]  }
   0x1   :  { %s17_s16 = sshll.u32 %s250_s15, 4  ;;  %s18_s16 = int_to_ptr.vmem [resolvable:$true] %s17_s16 }
   0x2   :  { %s236_s17 = scalar_lea.vmem %s18_s16, 2048  ;;  %p241_p1 = scmp.lt.s32.totalorder %s18_s16, %s18_s16 }
   0x3   :  { %p237_p0 = scmp.ne.s32.totalorder %s18_s16, %s236_s17  ;;  %p242_p2 = scmp.lt.s32.totalorder %s236_s17, %s236_s17 }
   0x5   :  { %p243_p3 = por %p242_p2, %p241_p1 }
   0x7   :  { %p244_p4 = pnand %p243_p3, %p237_p0 }
   0x9   :  { %247 = shalt.err (!%p244_p4)
}
   0xa   :  { %s251_s18 = smov 128   ;;  %s252_s19 = smov 8  }
   0xb   :  { %23 = dma.hbm_to_vmem [thread:$0]  %s300_s1, 2048, %s18_s16, [#allocation3], %s251_s18, %s251_s18, %s252_s19  }
   0xc   :  { %248 = dma.done.wait [#allocation3], 2048  }
   0xd   :  { %249 = vsyncadd [#allocation3], 4294965248  ;;  %v48_v0 = vld [vmem:[#allocation2 + $0x78] sm:$0xff]  ;;  %v47_v1 = vld [vmem:[#allocation2 + $0x70] sm:$0xff] }
   0xe   :  { %190 = vmatprep.subr.mxu0 %v48_v0  ;;  %v46_v2 = vld [vmem:[#allocation2 + $0x68] sm:$0xff]  ;;  %v45_v3 = vld [vmem:[#allocation2 + $0x60] sm:$0xff]  ;;  %v44_v5 = vld [vmem:[#allocation2 + $0x58] sm:$0xff] }
   0xf   :  { %191 = vmatpush3.msra.mxu0 %v48_v0  ;;  %v31_v4 = vld [vmem:[%s299_s0] sm:$0xff]  ;;  %v43_v6 = vld [vmem:[#allocation2 + $0x50] sm:$0xff]  ;;  %v42_v7 = vld [vmem:[#allocation2 + $0x48] sm:$0xff] }
  0x10   :  { %192 = vmatprep.subr.mxu0 %v47_v1  ;;  %222 = vmatprep.mubr.f32.mxu0 %v31_v4  ;;  %v41_v8 = vld [vmem:[#allocation2 + $0x40] sm:$0xff]  ;;  %v40_v9 = vld [vmem:[#allocation2 + $0x38] sm:$0xff]  ;;  %v39_v10 = vld [vmem:[#allocation2 + $0x30] sm:$0xff] }
  0x11   :  { %193 = vmatpush3.msra.mxu0 %v47_v1  ;;  %v38_v11 = vld [vmem:[#allocation2 + $0x28] sm:$0xff]  ;;  %v37_v12 = vld [vmem:[#allocation2 + $0x20] sm:$0xff]  ;;  %v36_v13 = vld [vmem:[#allocation2 + $0x18] sm:$0xff] }
  0x12   :  { %194 = vmatprep.subr.mxu0 %v46_v2  ;;  %v35_v14 = vld [vmem:[#allocation2 + $0x10] sm:$0xff]  ;;  %v34_v15 = vld [vmem:[#allocation2 + $0x8] sm:$0xff]  ;;  %v33_v16 = vld [vmem:[#allocation2] sm:$0xff] }
  0x13   :  { %195 = vmatpush3.msra.mxu0 %v46_v2  ;;  %v32_v17 = vld [vmem:[%s299_s0 + $0x8] sm:$0xff]  ;;  %v170_v18 = vld [vmem:[%s301_s2] ss:$0 sm:$0xff] }
  0x14   :  { %196 = vmatprep.subr.mxu0 %v45_v3  ;;  %v171_v20 = vld [vmem:[%s302_s3] ss:$0 sm:$0xff] }
  0x15   :  { %197 = vmatpush3.msra.mxu0 %v45_v3 }
  0x16   :  { %198 = vmatprep.subr.mxu0 %v44_v5 }
  0x17   :  { %199 = vmatpush3.msra.mxu0 %v44_v5 }
  0x18   :  { %200 = vmatprep.subr.mxu0 %v43_v6 }
  0x19   :  { %201 = vmatpush3.msra.mxu0 %v43_v6 }
  0x1a   :  { %202 = vmatprep.subr.mxu0 %v42_v7 }
  0x1b   :  { %203 = vmatpush3.msra.mxu0 %v42_v7 }
  0x1c   :  { %204 = vmatprep.subr.mxu0 %v41_v8 }
  0x1d   :  { %205 = vmatpush3.msra.mxu0 %v41_v8 }
  0x1e   :  { %206 = vmatprep.subr.mxu0 %v40_v9 }
  0x1f   :  { %207 = vmatpush3.msra.mxu0 %v40_v9 }
  0x20   :  { %208 = vmatprep.subr.mxu0 %v39_v10 }
  0x21   :  { %209 = vmatpush3.msra.mxu0 %v39_v10 }
  0x22   :  { %210 = vmatprep.subr.mxu0 %v38_v11 }
  0x23   :  { %211 = vmatpush3.msra.mxu0 %v38_v11 }
  0x24   :  { %212 = vmatprep.subr.mxu0 %v37_v12 }
  0x25   :  { %213 = vmatpush3.msra.mxu0 %v37_v12 }
  0x26   :  { %214 = vmatprep.subr.mxu0 %v36_v13 }
  0x27   :  { %215 = vmatpush3.msra.mxu0 %v36_v13 }
  0x28   :  { %216 = vmatprep.subr.mxu0 %v35_v14 }
  0x29   :  { %217 = vmatpush3.msra.mxu0 %v35_v14 }
  0x2a   :  { %218 = vmatprep.subr.mxu0 %v34_v15 }
  0x2b   :  { %219 = vmatpush3.msra.mxu0 %v34_v15 }
  0x2c   :  { %220 = vmatprep.subr.mxu0 %v33_v16 }
  0x2d   :  { %221 = vmatpush3.msra.mxu0 %v33_v16 }
  0x2e   :  { %223 = vmatmul.mubr.f32.vlgmr.msra.gmra.mxu0 %v32_v17 }
  0xee   :  { %v224_v19 = vpop.f32.mrf.mxu0 }
  0xef   :  { %v153_v21 = vmul.f32 %v224_v19, %v170_v18 }
  0xf0   :  { %v115_v22 = vpop.f32.mrf.mxu0 }
  0xf1   :  { %v162_v23 = vadd.f32 %v171_v20, %v153_v21  ;;  %v152_v24 = vmul.f32 %v170_v18, %v115_v22 }
  0xf3   :  { %164 = vst [vmem:[%s303_s4 + $0x8] sm:$0xff] %v162_v23  ;;  %v161_v25 = vadd.f32 %v171_v20, %v152_v24 }
  0xf5   :  { %163 = vst [vmem:[%s303_s4] sm:$0xff] %v161_v25 }
  0xf6   :  { %169 = vsyncpa [#allocation3], 1 }

</bundles_post_ra>
